<compile_context>
chip_gen: v6e
topology: v6e:2x2x1
jax: 0.10.0
libtpu: 0.0.40
codegen_flags: <defaults>
</compile_context>

<pallas_src>
import jax
import jax.numpy as jnp
from jax.experimental import pallas as pl
from jax.experimental.pallas import tpu as pltpu


def _copy_kernel(x_ref, o_ref):
    # Pure lane-dense load/store of a (B, TILE) tile.
    o_ref[...] = x_ref[...]


_LANE = 128
# Per-buffer target. With double buffering on both input and output there are
# ~4 live buffers, so ~2 MiB/tile keeps total VMEM use around 8 MiB — safe on
# v5e (16 MiB scoped default), v6e (32 MiB) and v7x (32 MiB scoped / 64 MiB phys).
_MAX_TILE_BYTES = 2 * 1024 * 1024


def no_pooling(all_hidden_states: jnp.ndarray) -> jnp.ndarray:
    """Pallas equivalent of NoPooling.forward: (B, ...) -> (B, -1)."""
    b = all_hidden_states.shape[0]
    flat_len = 1
    for d in all_hidden_states.shape[1:]:
        flat_len *= d

    # Metadata-only reshape for contiguous row-major input.
    x2 = all_hidden_states.reshape(b, flat_len)
    itemsize = jnp.dtype(x2.dtype).itemsize

    if flat_len > _LANE and flat_len % _LANE == 0:
        # Largest lane-dense tile under the per-buffer byte budget.
        max_lanes = max(_LANE, (_MAX_TILE_BYTES // (b * itemsize)) // _LANE * _LANE)
        tile = min(flat_len, max_lanes)
        # Prefer a tile that divides flat_len so every output store is an
        # unmasked full-lane vst (lane-dense output is the big lever here).
        while flat_len % tile != 0 and tile > _LANE:
            tile -= _LANE
    else:
        # flat_len tiny or not a multiple of 128: single full-extent block
        # along the lane axis (block last dim == full array dim is allowed).
        tile = flat_len

    grid = (pl.cdiv(flat_len, tile),)

    out = pl.pallas_call(
        _copy_kernel,
        out_shape=jax.ShapeDtypeStruct((b, flat_len), x2.dtype),
        grid=grid,
        in_specs=[pl.BlockSpec((b, tile), lambda i: (0, i))],
        out_specs=pl.BlockSpec((b, tile), lambda i: (0, i)),
        compiler_params=pltpu.CompilerParams(
            # Independent tiles: lets v7x shard the copy across its 2 TCs.
            dimension_semantics=("parallel",),
        ),
        cost_estimate=pl.CostEstimate(
            flops=0,
            transcendentals=0,
            bytes_accessed=2 * b * flat_len * itemsize,
        ),
    )(x2)
    return out


if __name__ == "__main__":
    # NoPooling has no parameters (emb_dim is unused in forward).
    key = jax.random.PRNGKey(0)

    # Transformer-style hidden states: (batch, seq, hidden).
    B, S, H = 2, 8, 32
    x = jax.random.normal(key, (B, S, H), dtype=jnp.float32)
    y = jax.block_until_ready(no_pooling(x))
    assert y.shape == (B, S * H), y.shape
    assert jnp.array_equal(y, x.reshape(B, -1)), "mismatch vs reference reshape"

    # Higher-rank input exercises the multi-dim flatten + tiled path.
    x4 = jax.random.normal(jax.random.PRNGKey(1), (2, 4, 16, 16), dtype=jnp.float32)
    y4 = jax.block_until_ready(no_pooling(x4))
    assert y4.shape == (2, 4 * 16 * 16), y4.shape
    assert jnp.array_equal(y4, x4.reshape(2, -1)), "mismatch vs reference reshape (4D)"

    print("KERNEL_OK")
</pallas_src>

<mosaic_0001>
module attributes {stable_mosaic.version = 11 : i64} {
  func.func @_copy_kernel(%arg0: i32, %arg1: memref<2x256xf32, #tpu.memory_space<vmem>>, %arg2: memref<2x256xf32, #tpu.memory_space<vmem>>) attributes {dimension_semantics = [#tpu.dimension_semantics<parallel>], iteration_bounds = array<i64: 1>, scalar_prefetch = 0 : i64, scratch_operands = 0 : i64, tpu.core_type = #tpu.core_type<tc>, window_params = [{transform_indices = @transform_0, window_bounds = array<i64: 2, 256>}, {transform_indices = @transform_1, window_bounds = array<i64: 2, 256>}]} {
    %c0 = arith.constant 0 : index
    %c0_0 = arith.constant 0 : index
    %0 = vector.load %arg1[%c0, %c0_0] : memref<2x256xf32, #tpu.memory_space<vmem>>, vector<2x256xf32>
    %c0_1 = arith.constant 0 : index
    %c0_2 = arith.constant 0 : index
    %1 = vector.load %arg2[%c0_1, %c0_2] : memref<2x256xf32, #tpu.memory_space<vmem>>, vector<2x256xf32>
    tpu.vector_store %arg2[%c0_1, %c0_2], %0 {strides = array<i32>} : memref<2x256xf32, #tpu.memory_space<vmem>>, vector<2x256xf32>,
    return
  }
  func.func @transform_0(%arg0: i32) -> (i32, i32) {
    %c0_i32 = arith.constant 0 : i32
    %c0_i32_0 = arith.constant 0 : i32
    return %c0_i32, %arg0 : i32, i32
  }
  func.func @transform_1(%arg0: i32) -> (i32, i32) {
    %c0_i32 = arith.constant 0 : i32
    %c0_i32_0 = arith.constant 0 : i32
    return %c0_i32, %arg0 : i32, i32
  }
}

</mosaic_0001>

<bundles_post_ra>
// kernel: tpu_custom_call.1
= control target key start
LH: loop header
LB: loop body
LE: loop exit
PB: predicated region body
PF: predicated region fallthrough
CT: control target
= control target key end

     0   :  { %6 = vsyncpa [#allocation3], 0  ;;  %s102_s0 = inlined_call_operand.hbm [shape: f32[2,256], index: 0, kind: input, shape index: {}]   ;;  %s103_s1 = inlined_call_operand.hbm [shape: f32[2,256], index: 1, kind: output, shape index: {}]  }
   0x1   :  { %7 = vsyncpa [#allocation4], 0  ;;  %s84_s6 = smov [#allocation2]  }
   0x2   :  { %s14_s7 = sshll.u32 %s84_s6, 4  ;;  %s15_s7 = int_to_ptr.vmem [resolvable:$true] %s14_s7 }
   0x3   :  { %s48_s8 = scalar_lea.vmem %s15_s7, 64  ;;  %p53_p1 = scmp.lt.s32.totalorder %s15_s7, %s15_s7 }
   0x4   :  { %p49_p0 = scmp.ne.s32.totalorder %s15_s7, %s48_s8  ;;  %p54_p2 = scmp.lt.s32.totalorder %s48_s8, %s48_s8 }
   0x6   :  { %p55_p3 = por %p54_p2, %p53_p1 }
   0x8   :  { %p56_p4 = pnand %p55_p3, %p49_p0 }
   0xa   :  { %59 = shalt.err (!%p56_p4)
}
   0xb   :  { %17 = dma.hbm_to_vmem [thread:$0]  %s102_s0, 64, %s15_s7, [#allocation3]  }
   0xc   :  { %80 = dma.done.wait [#allocation3], 64  }
   0xd   :  { %81 = vsyncadd [#allocation3], 4294967232  ;;  %s85_s11 = smov [#allocation5]   ;;  %v21_v0 = vld [vmem:[#allocation2] sm:$0xf] }
   0xe   :  { %s29_s12 = sshll.u32 %s85_s11, 4  ;;  %22 = vst [vmem:[#allocation5] sm:$0xf] %v21_v0  ;;  %s30_s12 = int_to_ptr.vmem [resolvable:$true] %s29_s12 }
   0xf   :  { %s60_s13 = scalar_lea.vmem %s30_s12, 64  ;;  %p65_p6 = scmp.lt.s32.totalorder %s30_s12, %s30_s12 }
  0x10   :  { %p61_p5 = scmp.ne.s32.totalorder %s30_s12, %s60_s13  ;;  %p66_p7 = scmp.lt.s32.totalorder %s60_s13, %s60_s13 }
  0x12   :  { %p67_p8 = por %p66_p7, %p65_p6 }
  0x14   :  { %p68_p9 = pnand %p67_p8, %p61_p5 }
  0x16   :  { %71 = shalt.err (!%p68_p9)
}
  0x17   :  { %32 = dma.vmem_to_hbm [thread:$0]  %s30_s12, 64, %s103_s1, [#allocation4]  }
  0x18   :  { %82 = dma.done.wait [#allocation4], 64  }
  0x19   :  { %83 = vsyncadd [#allocation4], 4294967232 }
  0x1a   :  { %36 = vsyncpa [#allocation3], 1 }
  0x1b   :  { %37 = vsyncpa [#allocation4], 1 }

</bundles_post_ra>
